<compile_context>
chip_gen: v7x
topology: tpu7x:2x2x1
jax: 0.10.0
libtpu: 0.0.40
codegen_flags: <defaults>
</compile_context>

<pallas_src>
import functools

import jax
import jax.numpy as jnp
from jax.experimental import pallas as pl
from jax.experimental.pallas import tpu as pltpu


def _roundup(n, m):
    return -(-n // m) * m


def _round8(n):
    return _roundup(n, 8)


@functools.lru_cache(maxsize=None)
def _tpu_vmem_capacity():
    try:
        return int(pltpu.get_tpu_info().vmem_capacity_bytes)
    except Exception:
        return 64 * 1024 * 1024            # conservative default (v7x per-TC VMEM)


def _vmem_budget_bytes():
    # Generation-aware working-set budget: v7x 64 MiB/TC, v5e/v6e 128 MiB.
    return (20 << 20) if _tpu_vmem_capacity() <= (64 << 20) else (44 << 20)


def _vmem_limit_bytes():
    return (30 << 20) if _tpu_vmem_capacity() <= (64 << 20) else (64 << 20)


def _plan_tiles(l_out, tl):
    n_tiles = -(-l_out // tl)
    n_halves = 2 if n_tiles >= 2 else 1    # feed both v7x TensorCores even at B=1
    tph = -(-n_tiles // n_halves)
    return n_halves, tph, n_halves * tph * tl


# --------------------------------------------------------------------------
# Pallas kernels
# --------------------------------------------------------------------------
def _conv1d_kernel(*refs, K, dilation, tl, tiles_per_half, pre_leaky, post_tanh,
                   has_res):
    # refs: x_hbm (ANY, bf16), w (C_out_p, K*C_in_p) bf16, b (C_out_p,1) f32,
    #       [res (1,C_out_p,tl) bf16], out (1,C_out_p,tl) bf16,
    #       xbuf VMEM (2, C_in_p, win) bf16, sem DMA (2,)
    if has_res:
        x_hbm, w_ref, b_ref, res_ref, o_ref, xbuf, sem = refs
    else:
        x_hbm, w_ref, b_ref, o_ref, xbuf, sem = refs
        res_ref = None

    bb = pl.program_id(0)
    hh = pl.program_id(1)
    jj = pl.program_id(2)
    win = xbuf.shape[2]
    cur = hh * tiles_per_half + jj          # global time-tile index

    def fetch(tile_idx, slot):
        start = pl.multiple_of(tile_idx * tl, 128)
        pltpu.make_async_copy(
            x_hbm.at[bb, :, pl.ds(start, win)], xbuf.at[slot], sem.at[slot]
        ).start()

    @pl.when(jj == 0)
    def _():
        fetch(cur, 0)                       # prime this (batch, half) chain

    slot = jj & 1
    # Wait on the same (src slice, dst, sem) descriptor that was started for
    # the current tile (prime at jj==0 or prefetch from the previous step).
    start_cur = pl.multiple_of(cur * tl, 128)
    pltpu.make_async_copy(
        x_hbm.at[bb, :, pl.ds(start_cur, win)], xbuf.at[slot], sem.at[slot]
    ).wait()

    @pl.when(jj + 1 < tiles_per_half)
    def _():
        fetch(cur + 1, 1 - slot)            # prefetch next window during compute

    xw = xbuf[slot]                         # (C_in_p, win) bf16
    if pre_leaky:
        xw = jnp.maximum(xw, 0.2 * xw)      # hoisted LeakyReLU(0.2), once

    # im2col: fold the K taps into the MXU contraction dim -> ONE bf16 matmul.
    if K > 1:
        xcol = jnp.concatenate(
            [xw[:, k * dilation:k * dilation + tl] for k in range(K)], axis=0)
    else:
        xcol = xw[:, :tl]
    acc = jnp.dot(w_ref[...], xcol, preferred_element_type=jnp.float32)
    acc = acc + b_ref[...]                  # f32 bias (C_out_p, 1) broadcast
    if res_ref is not None:
        acc = acc + res_ref[0].astype(jnp.float32)   # fused residual add
    if post_tanh:
        acc = jnp.tanh(acc)
    o_ref[0, :, :] = acc.astype(o_ref.dtype)


def _pick_tl(c_in_p, c_out_p, K, dilation, l_out, has_res):
    """Largest time tile (multiple of 128) whose VMEM residency fits a
    generation-aware budget."""
    budget = _vmem_budget_bytes()
    halo = (K - 1) * dilation
    chosen = 128
    for tl in (8192, 4096, 2048, 1024, 512, 256, 128):
        win = tl + (_roundup(halo, 128) if halo else 0)
        est = (2 * c_in_p * win * 2            # double-buffered bf16 input window
               + c_in_p * win * 2              # activated window copy
               + 2 * K * c_in_p * tl * 2       # im2col operand (+ slice slack)
               + c_out_p * tl * 4              # f32 accumulator
               + 2 * c_out_p * tl * 2          # bf16 output double-buffer
               + (2 * c_out_p * tl * 2 if has_res else 0)
               + 2 * c_out_p * K * c_in_p * 2  # weights (2 pipeline buffers)
               + (64 << 10))
        if est <= budget:
            chosen = tl
            break
    chosen = min(chosen, _roundup(max(l_out, 1), 128))
    return max(chosen, 128)


def pallas_conv1d(x, w, b, *, dilation=1, refl=0, zpad_left=0, l_out=None,
                  pre_leaky=False, post_tanh=False, res=None,
                  keep_padded=False, tl=None):
    """Stride-1 Conv1d over x (bf16 in HBM), streamed as halo windows via a
    manually double-buffered DMA chain, one MXU matmul per tile (im2col)."""
    assert not (refl and zpad_left)
    x = x.astype(jnp.bfloat16)
    B, C_in_x, Lx0 = x.shape
    C_out, C_in_w, K = w.shape
    C_in_p, C_out_p = _round8(C_in_w), _round8(C_out)
    assert C_in_x in (C_in_w, C_in_p), (C_in_x, C_in_w, C_in_p)
    halo = (K - 1) * dilation
    if l_out is None:
        l_out = Lx0 + 2 * refl + zpad_left - halo
    assert l_out >= 1

    if tl is None:
        tl = _pick_tl(C_in_p, C_out_p, K, dilation, l_out, res is not None)
    n_halves, tph, l_out_p = _plan_tiles(l_out, tl)
    win = tl + (_roundup(halo, 128) if halo else 0)   # lane-multiple DMA window
    needed = (n_halves * tph - 1) * tl + win

    # Single-copy input staging: [left zeros | left reflect | x | right reflect
    # | zero tail] in ONE concatenate (no copy at all when nothing is needed).
    pieces = []
    if zpad_left:
        pieces.append(jnp.zeros((B, C_in_x, zpad_left), x.dtype))
    if refl:
        pieces.append(x[:, :, refl:0:-1])
    pieces.append(x)
    if refl:
        pieces.append(x[:, :, -2:-refl - 2:-1])
    tail = needed - (zpad_left + 2 * refl + Lx0)
    if tail > 0:
        pieces.append(jnp.zeros((B, C_in_x, tail), x.dtype))
    x_full = jnp.concatenate(pieces, axis=2) if len(pieces) > 1 else x
    if C_in_x < C_in_p:
        x_full = jnp.pad(x_full, ((0, 0), (0, C_in_p - C_in_x), (0, 0)))

    # im2col weight layout: row index k*C_in_p + c_in.
    w_p = jnp.pad(w, ((0, C_out_p - C_out), (0, C_in_p - C_in_w), (0, 0)))
    w2 = jnp.transpose(w_p, (0, 2, 1)).reshape(C_out_p, K * C_in_p)
    w2 = w2.astype(jnp.bfloat16)
    b_p = jnp.pad(b, (0, C_out_p - C_out)).reshape(C_out_p, 1).astype(jnp.float32)

    in_specs = [
        pl.BlockSpec(memory_space=pl.ANY),                         # x stays in HBM
        pl.BlockSpec((C_out_p, K * C_in_p), lambda bb, hh, jj: (0, 0)),
        pl.BlockSpec((C_out_p, 1), lambda bb, hh, jj: (0, 0)),
    ]
    args = [x_full, w2, b_p]
    if res is not None:
        assert res.shape == (B, C_out_p, l_out_p), (res.shape, (B, C_out_p, l_out_p))
        args.append(res.astype(jnp.bfloat16))
        in_specs.append(pl.BlockSpec((1, C_out_p, tl),
                                     lambda bb, hh, jj: (bb, 0, hh * tph + jj)))

    kern = functools.partial(_conv1d_kernel, K=K, dilation=dilation, tl=tl,
                             tiles_per_half=tph, pre_leaky=pre_leaky,
                             post_tanh=post_tanh, has_res=res is not None)
    out = pl.pallas_call(
        kern,
        out_shape=jax.ShapeDtypeStruct((B, C_out_p, l_out_p), jnp.bfloat16),
        grid_spec=pltpu.PrefetchScalarGridSpec(
            num_scalar_prefetch=0,
            grid=(B, n_halves, tph),
            in_specs=in_specs,
            out_specs=pl.BlockSpec((1, C_out_p, tl),
                                   lambda bb, hh, jj: (bb, 0, hh * tph + jj)),
            scratch_shapes=[pltpu.VMEM((2, C_in_p, win), jnp.bfloat16),
                            pltpu.SemaphoreType.DMA((2,))],
        ),
        compiler_params=pltpu.CompilerParams(
            dimension_semantics=("parallel", "parallel", "arbitrary"),
            vmem_limit_bytes=_vmem_limit_bytes()),
    )(*args)
    if keep_padded:
        return out
    if C_out_p == C_out and l_out_p == l_out:
        return out
    return out[:, :C_out, :l_out]


def _add_kernel(a_ref, b_ref, o_ref):
    o_ref[...] = a_ref[...] + b_ref[...]


def pallas_add(a, b):
    assert a.shape == b.shape and a.dtype == b.dtype
    B, C, L = a.shape
    L_p = _roundup(L, 128)
    tl = min(4096, L_p)
    while L_p % tl:
        tl -= 128
    n = L_p // tl
    if L_p != L:
        a = jnp.pad(a, ((0, 0), (0, 0), (0, L_p - L)))
        b = jnp.pad(b, ((0, 0), (0, 0), (0, L_p - L)))
    out = pl.pallas_call(
        _add_kernel,
        out_shape=jax.ShapeDtypeStruct((B, C, L_p), a.dtype),
        grid_spec=pltpu.PrefetchScalarGridSpec(
            num_scalar_prefetch=0,
            grid=(B, n),
            in_specs=[pl.BlockSpec((1, C, tl), lambda bb, jj: (bb, 0, jj)),
                      pl.BlockSpec((1, C, tl), lambda bb, jj: (bb, 0, jj))],
            out_specs=pl.BlockSpec((1, C, tl), lambda bb, jj: (bb, 0, jj)),
        ),
        compiler_params=pltpu.CompilerParams(
            dimension_semantics=("parallel", "parallel")),
    )(a, b)
    return out if L_p == L else out[:, :, :L]


# --------------------------------------------------------------------------
# Shared glue (polyphase ConvTranspose, reference helpers)
# --------------------------------------------------------------------------
def _reflect(x, p):
    return jnp.pad(x, ((0, 0), (0, 0), (p, p)), mode="reflect") if p else x


def _convt_prep(x, w, stride, padding):
    """Fallback: ConvTranspose1d (output_padding=0) as zero-stuff + stride-1 conv."""
    B, C_in, L = x.shape
    _, C_out, K = w.shape
    l_out = (L - 1) * stride - 2 * padding + K
    up_len = (L - 1) * stride + 1
    up = jnp.zeros((B, C_in, up_len), x.dtype).at[:, :, ::stride].set(x)
    edge = K - 1 - padding
    up = jnp.pad(up, ((0, 0), (0, 0), (edge, edge)))
    w_eq = jnp.transpose(jnp.flip(w, axis=2), (1, 0, 2))       # (C_out, C_in, K)
    return up, w_eq, l_out


def _polyphase_weights(w, stride, padding):
    """Fold the `stride` output phases of a ConvTranspose1d into the output-
    channel dim of a small stride-1 conv.  Returns Wc (s*C_out, C_in, A), PL, PR."""
    C_in, C_out, K = w.shape
    s, p = stride, padding
    J = K // s
    offs = [(r + p) // s for r in range(s)]
    min_off, max_off = min(offs), max(offs)
    PL = (J - 1) - min_off
    PR = max_off
    A = J + (max_off - min_off)
    r_idx = jnp.arange(s)
    taps = []
    for a in range(A):
        t = r_idx + p + (PL - a) * s                            # tap index per phase
        valid = (t >= 0) & (t < K)
        wa = jnp.take(w, jnp.clip(t, 0, K - 1), axis=2)         # (C_in, C_out, s)
        wa = jnp.where(valid[None, None, :], wa, 0.0)
        wa = jnp.transpose(wa, (2, 1, 0)).reshape(s * C_out, C_in)
        taps.append(wa)
    Wc = jnp.stack(taps, axis=-1)                               # (s*C_out, C_in, A)
    return Wc, PL, PR


# Pallas ops -----------------------------------------------------------------
def p_conv(x, p, *, dilation=1, refl=0, pre_leaky=False, post_tanh=False,
           res=None, keep_padded=False, tl=None, l_out=None):
    return pallas_conv1d(x, p["w"], p["b"], dilation=dilation, refl=refl,
                         l_out=l_out, pre_leaky=pre_leaky, post_tanh=post_tanh,
                         res=res, keep_padded=keep_padded, tl=tl)


def p_convt(x, u, *, pre_leaky=False):
    w, b = u["p"]["w"], u["p"]["b"]
    s, pad = u["stride"], u["pad"]
    C_in, C_out, K = w.shape
    B, _, L = x.shape
    if K % s == 0 and 2 * pad == K - s:
        # Polyphase: 3-tap stride-1 conv on the LOW-res input, phases in channels.
        Wc, PL, PR = _polyphase_weights(w, s, pad)
        bc = jnp.tile(b, s)
        y = pallas_conv1d(x, Wc, bc, zpad_left=PL, l_out=L,
                          pre_leaky=pre_leaky)                  # (B, s*C_out, L)
        # TODO(synk): fuse this phase interleave into the kernel epilogue.
        y = y.reshape(B, s, C_out, L)
        return jnp.transpose(y, (0, 2, 3, 1)).reshape(B, C_out, L * s)
    # Odd-ratio / output_padding>0 layers: zero-stuffing fallback only.
    up, w_eq, l_out = _convt_prep(x, w, s, pad)
    return pallas_conv1d(up, w_eq, b, l_out=l_out, pre_leaky=pre_leaky)


def p_res_stack(x, rp):
    d = rp["dil"]
    ch = rp["c1"]["w"].shape[0]
    l = x.shape[2]
    ch_p = _round8(ch)
    tl = _pick_tl(ch_p, ch_p, 3, d, l, True)
    # shortcut k=1 (kept padded so it fuses as `res` into the final conv)
    s_pad = p_conv(x, rp["sc"], keep_padded=True, tl=tl)
    # k=3 dilated conv; keep its padded layout so the k=1 conv consumes it with
    # zero wrapper pad/crop copies.
    h_pad = p_conv(x, rp["c1"], dilation=d, refl=d, pre_leaky=True,
                   keep_padded=True, tl=tl)
    return p_conv(h_pad, rp["c2"], pre_leaky=True, res=s_pad, tl=tl, l_out=l)


PALLAS_OPS = (p_conv, p_convt, pallas_add, p_res_stack)


# Pure-JAX reference ops (same math; bf16 flag mirrors the kernel's MXU dtypes)
def _ref_core(x, w, b, *, dilation, l_out, pre_leaky, post_tanh, bf16):
    if bf16:
        x = x.astype(jnp.bfloat16)
    if pre_leaky:
        x = jnp.maximum(x, 0.2 * x)
    C_out, _, K = w.shape
    wk = w.astype(jnp.bfloat16) if bf16 else w
    acc = jnp.broadcast_to(b[None, :, None].astype(jnp.float32),
                           (x.shape[0], C_out, l_out))
    for k in range(K):
        xs = x[:, :, k * dilation:k * dilation + l_out]
        acc = acc + jnp.einsum("oi,bil->bol", wk[:, :, k], xs,
                               preferred_element_type=jnp.float32)
    if post_tanh:
        acc = jnp.tanh(acc)
    return acc


def make_ref_ops(bf16):
    def conv(x, p, *, dilation=1, refl=0, pre_leaky=False, post_tanh=False):
        x = _reflect(x, refl)
        K = p["w"].shape[2]
        l_out = x.shape[2] - (K - 1) * dilation
        return _ref_core(x, p["w"], p["b"], dilation=dilation, l_out=l_out,
                         pre_leaky=pre_leaky, post_tanh=post_tanh, bf16=bf16)

    def convt(x, u, *, pre_leaky=False):
        up, w_eq, l_out = _convt_prep(x, u["p"]["w"], u["stride"], u["pad"])
        return _ref_core(up, w_eq, u["p"]["b"], dilation=1, l_out=l_out,
                         pre_leaky=pre_leaky, post_tanh=False, bf16=bf16)

    def add(a, b):
        return a + b

    def res_stack(x, rp):
        d = rp["dil"]
        h = conv(x, rp["c1"], dilation=d, refl=d, pre_leaky=True)
        h = conv(h, rp["c2"], pre_leaky=True)
        s = conv(x, rp["sc"])
        return s + h

    return (conv, convt, add, res_stack)


# --------------------------------------------------------------------------
# VOCGenerator forward (structure shared between Pallas and reference paths)
# --------------------------------------------------------------------------
def generator_forward(params, mel, ops):
    conv, convt, add, res_stack = ops
    mel = (mel + 5.0) / 5.0                                     # input normalization
    x = conv(mel, params["start"], refl=3)                      # ReflPad(3)+Conv k=7

    x = convt(x, params["up1"], pre_leaky=True)
    for rp in params["res1"]:
        x = res_stack(x, rp)
    x = convt(x, params["up2"], pre_leaky=True)
    for rp in params["res2"]:
        x = res_stack(x, rp)
    out1 = conv(x, params["sub1"], refl=3, pre_leaky=True, post_tanh=True)

    x = convt(x, params["up3"], pre_leaky=True)
    x = add(x, convt(mel, params["skip1"]))
    for rp in params["res3"]:
        x = res_stack(x, rp)
    out2 = conv(x, params["sub2"], refl=3, pre_leaky=True, post_tanh=True)

    x = convt(x, params["up4"], pre_leaky=True)
    x = add(x, convt(mel, params["skip2"]))
    for rp in params["res4"]:
        x = res_stack(x, rp)
    out3 = conv(x, params["sub3"], refl=3, pre_leaky=True, post_tanh=True)

    x = convt(x, params["up5"], pre_leaky=True)
    x = add(x, convt(mel, params["skip3"]))
    for rp in params["res5"]:
        x = res_stack(x, rp)
    out4 = conv(x, params["sub4"], refl=3, pre_leaky=True, post_tanh=True)

    x = convt(x, params["up6"], pre_leaky=True)
    x = add(x, convt(mel, params["skip4"]))
    for rp in params["res6"]:
        x = res_stack(x, rp)
    out = conv(x, params["out"], refl=3, pre_leaky=True, post_tanh=True)

    return out1, out2, out3, out4, out


# --------------------------------------------------------------------------
# Deterministic synthetic parameters (shapes follow VOCGenerator.__init__)
# --------------------------------------------------------------------------
def build_params(key, mel_channel, n_res, ratios, mult, out_band):
    assert all(r % 2 == 0 for r in ratios), "odd ratios need output_padding"
    keys = iter(jax.random.split(key, 256))
    W_STD, B_STD = 0.1, 0.1

    def conv_p(c_out, c_in, k):
        k1, k2 = jax.random.split(next(keys))
        return {"w": W_STD * jax.random.normal(k1, (c_out, c_in, k), jnp.float32),
                "b": B_STD * jax.random.normal(k2, (c_out,), jnp.float32)}

    def convt_p(c_in, c_out, k, stride, pad):
        k1, k2 = jax.random.split(next(keys))
        return {"p": {"w": W_STD * jax.random.normal(k1, (c_in, c_out, k), jnp.float32),
                      "b": B_STD * jax.random.normal(k2, (c_out,), jnp.float32)},
                "stride": stride, "pad": pad}

    def res_list(ch):
        return [{"dil": 3 ** j,
                 "c1": conv_p(ch, ch, 3),
                 "c2": conv_p(ch, ch, 1),
                 "sc": conv_p(ch, ch, 1)} for j in range(n_res)]

    P = {}
    m = mult
    P["start"] = conv_p(m * 2, mel_channel, 7)

    r = ratios[0]
    P["up1"] = convt_p(m * 2, m, r * 2, r, r // 2 + r % 2)
    P["res1"] = res_list(m)

    r = ratios[1]; m //= 2
    P["up2"] = convt_p(m * 2, m, r * 2, r, r // 2 + r % 2)
    P["res2"] = res_list(m)
    P["sub1"] = conv_p(out_band, m, 7)

    r = ratios[2]; m //= 2
    P["up3"] = convt_p(m * 2, m, r * 2, r, r // 2 + r % 2)
    P["skip1"] = convt_p(mel_channel, m, 64, 32, 16)
    P["res3"] = res_list(m)
    P["sub2"] = conv_p(out_band, m, 7)

    r = ratios[3]; m //= 2
    P["up4"] = convt_p(m * 2, m, r * 2, r, r // 2 + r % 2)
    P["skip2"] = convt_p(mel_channel, m, 128, 64, 32)
    P["res4"] = res_list(m)
    P["sub3"] = conv_p(out_band, m, 7)

    r = ratios[4]; m //= 2
    P["up5"] = convt_p(m * 2, m, r * 2, r, r // 2 + r % 2)
    P["skip3"] = convt_p(mel_channel, m, 256, 128, 64)
    P["res5"] = res_list(m)
    P["sub4"] = conv_p(out_band, m, 7)

    r = ratios[5]; m //= 2
    P["up6"] = convt_p(m * 2, m, r * 2, r, r // 2 + r % 2)
    P["skip4"] = convt_p(mel_channel, m, 512, 256, 128)
    P["res6"] = res_list(m)
    P["out"] = conv_p(out_band, m, 7)
    return P


# --------------------------------------------------------------------------
if __name__ == "__main__":
    key = jax.random.PRNGKey(0)
    ku1, ku2, ku3, ku4, ku5, kp, kx = jax.random.split(key, 7)

    # ---- unit checks of the conv kernel machinery (multi-tile halo windows,
    # ---- time-split prefetch chains, im2col, pre-leaky, reflect pad) --------
    B, Cin, Cout, L, K = 2, 16, 24, 640, 7
    xu = 0.5 * jax.random.normal(ku1, (B, Cin, L + K - 1), jnp.float32)
    wu = 0.1 * jax.random.normal(ku2, (Cout, Cin, K), jnp.float32)
    bu = 0.1 * jax.random.normal(ku3, (Cout,), jnp.float32)
    got = pallas_conv1d(xu, wu, bu, pre_leaky=True, tl=128)
    want = _ref_core(xu, wu, bu, dilation=1, l_out=L, pre_leaky=True,
                     post_tanh=False, bf16=True)
    got = jax.block_until_ready(got).astype(jnp.float32)
    assert got.shape == (B, Cout, L)
    assert jnp.allclose(got, want, atol=1e-2, rtol=3e-2), \
        float(jnp.max(jnp.abs(got - want)))

    C2, L2, D2 = 8, 384, 3
    x2 = 0.5 * jax.random.normal(ku4, (1, C2, L2), jnp.float32)
    w2 = 0.1 * jax.random.normal(ku5, (C2, C2, 3), jnp.float32)
    b2 = jnp.zeros((C2,), jnp.float32)
    got2 = pallas_conv1d(x2, w2, b2, dilation=D2, refl=D2, pre_leaky=True, tl=128)
    want2 = _ref_core(_reflect(x2, D2), w2, b2, dilation=D2, l_out=L2,
                      pre_leaky=True, post_tanh=False, bf16=True)
    got2 = jax.block_until_ready(got2).astype(jnp.float32)
    assert jnp.allclose(got2, want2, atol=1e-2, rtol=3e-2), \
        float(jnp.max(jnp.abs(got2 - want2)))

    # ---- full VOCGenerator forward ------------------------------------------
    MEL_CHANNEL = 8
    N_RES = 1            # n_residual_layers (small for test)
    RATIOS = [4, 4, 2, 2, 2, 2]
    MULT = 32            # small version of the default 256
    OUT_BAND = 1
    B, T = 2, 8

    params = build_params(kp, MEL_CHANNEL, N_RES, RATIOS, MULT, OUT_BAND)
    mel = jax.random.normal(kx, (B, MEL_CHANNEL, T), jnp.float32)

    outs = generator_forward(params, mel, PALLAS_OPS)
    outs = jax.block_until_ready(outs)

    # Reference 1: pure-JAX with the SAME bf16 matmul operands / f32 accumulate
    # and a zero-stuffed ConvTranspose -> validates the polyphase / im2col /
    # fused-residual Pallas machinery tightly.
    refs_bf = generator_forward(params, mel, make_ref_ops(bf16=True))
    # Reference 2: full f32 -> checks bf16 operands keep module semantics.
    refs_f32 = generator_forward(params, mel, make_ref_ops(bf16=False))
    refs_bf = jax.block_until_ready(refs_bf)
    refs_f32 = jax.block_until_ready(refs_f32)

    expected = [(B, OUT_BAND, T * 16), (B, OUT_BAND, T * 32), (B, OUT_BAND, T * 64),
                (B, OUT_BAND, T * 128), (B, OUT_BAND, T * 256)]
    for o, rb, rf, es in zip(outs, refs_bf, refs_f32, expected):
        o = o.astype(jnp.float32)
        assert o.shape == es, (o.shape, es)
        assert bool(jnp.all(jnp.isfinite(o)))
        md_b = float(jnp.max(jnp.abs(o - rb)))
        assert jnp.allclose(o, rb, atol=1e-2, rtol=3e-2), f"bf16-mirror diff {md_b}"
        md_f = float(jnp.max(jnp.abs(o - rf)))
        assert md_f < 6e-2, f"f32-reference diff {md_f}"

    print("KERNEL_OK")
</pallas_src>

<mosaic_0001>
module attributes {stable_mosaic.version = 11 : i64} {
  func.func @_conv1d_kernel(%arg0: i32, %arg1: i32, %arg2: i32, %arg3: memref<2x16x896xbf16, #tpu.memory_space<any>>, %arg4: memref<24x112xbf16, #tpu.memory_space<vmem>>, %arg5: memref<24x1xf32, #tpu.memory_space<vmem>>, %arg6: memref<1x24x128xbf16, #tpu.memory_space<vmem>>, %arg7: memref<2x16x256xbf16, #tpu.memory_space<vmem>>, %arg8: memref<2x!tpu.dma_semaphore, #tpu.memory_space<semaphore_mem>>) attributes {dimension_semantics = [#tpu.dimension_semantics<parallel>, #tpu.dimension_semantics<parallel>, #tpu.dimension_semantics<arbitrary>], iteration_bounds = array<i64: 2, 2, 3>, scalar_prefetch = 0 : i64, scratch_operands = 2 : i64, tpu.core_type = #tpu.core_type<tc>, window_params = [{}, {pipeline_mode = #tpu.pipeline_mode<synchronous>, transform_indices = @transform_1, window_bounds = array<i64: 24, 112>}, {pipeline_mode = #tpu.pipeline_mode<synchronous>, transform_indices = @transform_2, window_bounds = array<i64: 24, 1>}, {transform_indices = @transform_3, window_bounds = array<i64: 1, 24, 128>}]} {
    %c3_i32 = arith.constant 3 : i32
    %0 = arith.muli %arg1, %c3_i32 : i32
    %1 = arith.addi %0, %arg2 : i32
    %c0_i32 = arith.constant 0 : i32
    %2 = arith.cmpi eq, %arg2, %c0_i32 : i32
    %3 = arith.extui %2 : i1 to i32
    %c0_i32_0 = arith.constant 0 : i32
    %4 = arith.cmpi ne, %3, %c0_i32_0 : i32
    scf.if %4 {
      %c128_i32_16 = arith.constant 128 : i32
      %41 = arith.muli %1, %c128_i32_16 : i32
      %42 = tpu.assume_multiple %41, 128 : i32
      %c0_i32_17 = arith.constant 0 : i32
      %c0_i32_18 = arith.constant 0 : i32
      %c0_i32_19 = arith.constant 0 : i32
      %43 = tpu.memref_slice %arg3[%arg0, %c0_i32_19, %42] : memref<2x16x896xbf16, #tpu.memory_space<any>> -> memref<1x16x256xbf16, #tpu.memory_space<any>>
      %44 = tpu.memref_squeeze %43 : memref<1x16x256xbf16, #tpu.memory_space<any>> -> memref<16x256xbf16, #tpu.memory_space<any>>
      %c0_i32_20 = arith.constant 0 : i32
      %c0_i32_21 = arith.constant 0 : i32
      %45 = tpu.memref_slice %arg7[%c0_i32_17, %c0_i32_20, %c0_i32_21] : memref<2x16x256xbf16, #tpu.memory_space<vmem>> -> memref<1x16x256xbf16, #tpu.memory_space<vmem>>
      %46 = tpu.memref_squeeze %45 : memref<1x16x256xbf16, #tpu.memory_space<vmem>> -> memref<16x256xbf16, #tpu.memory_space<vmem>>
      %47 = tpu.memref_slice %arg8[%c0_i32_18] : memref<2x!tpu.dma_semaphore, #tpu.memory_space<semaphore_mem>> -> memref<1x!tpu.dma_semaphore, #tpu.memory_space<semaphore_mem>>
      %48 = tpu.memref_squeeze %47 : memref<1x!tpu.dma_semaphore, #tpu.memory_space<semaphore_mem>> -> memref<!tpu.dma_semaphore, #tpu.memory_space<semaphore_mem>>
      tpu.enqueue_dma source(%44 : memref<16x256xbf16, #tpu.memory_space<any>>) target(%46 : memref<16x256xbf16, #tpu.memory_space<vmem>>) target_semaphore(%48 : memref<!tpu.dma_semaphore, #tpu.memory_space<semaphore_mem>>)
    } else {
    }
    %c1_i32 = arith.constant 1 : i32
    %5 = arith.andi %arg2, %c1_i32 : i32
    %c128_i32 = arith.constant 128 : i32
    %6 = arith.muli %1, %c128_i32 : i32
    %7 = tpu.assume_multiple %6, 128 : i32
    %c0_i32_1 = arith.constant 0 : i32
    %8 = tpu.memref_slice %arg3[%arg0, %c0_i32_1, %7] : memref<2x16x896xbf16, #tpu.memory_space<any>> -> memref<1x16x256xbf16, #tpu.memory_space<any>>
    %9 = tpu.memref_squeeze %8 : memref<1x16x256xbf16, #tpu.memory_space<any>> -> memref<16x256xbf16, #tpu.memory_space<any>>
    %c0_i32_2 = arith.constant 0 : i32
    %c0_i32_3 = arith.constant 0 : i32
    %10 = tpu.memref_slice %arg7[%5, %c0_i32_2, %c0_i32_3] : memref<2x16x256xbf16, #tpu.memory_space<vmem>> -> memref<1x16x256xbf16, #tpu.memory_space<vmem>>
    %11 = tpu.memref_squeeze %10 : memref<1x16x256xbf16, #tpu.memory_space<vmem>> -> memref<16x256xbf16, #tpu.memory_space<vmem>>
    %12 = tpu.memref_slice %arg8[%5] : memref<2x!tpu.dma_semaphore, #tpu.memory_space<semaphore_mem>> -> memref<1x!tpu.dma_semaphore, #tpu.memory_space<semaphore_mem>>
    %13 = tpu.memref_squeeze %12 : memref<1x!tpu.dma_semaphore, #tpu.memory_space<semaphore_mem>> -> memref<!tpu.dma_semaphore, #tpu.memory_space<semaphore_mem>>
    tpu.wait_dma2 semaphore(%13 : memref<!tpu.dma_semaphore, #tpu.memory_space<semaphore_mem>>) src(%9 : memref<16x256xbf16, #tpu.memory_space<any>>) dst(%11 : memref<16x256xbf16, #tpu.memory_space<vmem>>)
    %c1_i32_4 = arith.constant 1 : i32
    %14 = arith.addi %arg2, %c1_i32_4 : i32
    %c3_i32_5 = arith.constant 3 : i32
    %15 = arith.cmpi slt, %14, %c3_i32_5 : i32
    %16 = arith.extui %15 : i1 to i32
    %c0_i32_6 = arith.constant 0 : i32
    %17 = arith.cmpi ne, %16, %c0_i32_6 : i32
    scf.if %17 {
      %c1_i32_16 = arith.constant 1 : i32
      %41 = arith.addi %1, %c1_i32_16 : i32
      %c1_i32_17 = arith.constant 1 : i32
      %42 = arith.subi %c1_i32_17, %5 : i32
      %c128_i32_18 = arith.constant 128 : i32
      %43 = arith.muli %41, %c128_i32_18 : i32
      %44 = tpu.assume_multiple %43, 128 : i32
      %c0_i32_19 = arith.constant 0 : i32
      %45 = tpu.memref_slice %arg3[%arg0, %c0_i32_19, %44] : memref<2x16x896xbf16, #tpu.memory_space<any>> -> memref<1x16x256xbf16, #tpu.memory_space<any>>
      %46 = tpu.memref_squeeze %45 : memref<1x16x256xbf16, #tpu.memory_space<any>> -> memref<16x256xbf16, #tpu.memory_space<any>>
      %c0_i32_20 = arith.constant 0 : i32
      %c0_i32_21 = arith.constant 0 : i32
      %47 = tpu.memref_slice %arg7[%42, %c0_i32_20, %c0_i32_21] : memref<2x16x256xbf16, #tpu.memory_space<vmem>> -> memref<1x16x256xbf16, #tpu.memory_space<vmem>>
      %48 = tpu.memref_squeeze %47 : memref<1x16x256xbf16, #tpu.memory_space<vmem>> -> memref<16x256xbf16, #tpu.memory_space<vmem>>
      %49 = tpu.memref_slice %arg8[%42] : memref<2x!tpu.dma_semaphore, #tpu.memory_space<semaphore_mem>> -> memref<1x!tpu.dma_semaphore, #tpu.memory_space<semaphore_mem>>
      %50 = tpu.memref_squeeze %49 : memref<1x!tpu.dma_semaphore, #tpu.memory_space<semaphore_mem>> -> memref<!tpu.dma_semaphore, #tpu.memory_space<semaphore_mem>>
      tpu.enqueue_dma source(%46 : memref<16x256xbf16, #tpu.memory_space<any>>) target(%48 : memref<16x256xbf16, #tpu.memory_space<vmem>>) target_semaphore(%50 : memref<!tpu.dma_semaphore, #tpu.memory_space<semaphore_mem>>)
    } else {
    }
    %18 = arith.index_cast %5 : i32 to index
    %c0 = arith.constant 0 : index
    %c0_7 = arith.constant 0 : index
    %19 = vector.load %arg7[%18, %c0, %c0_7] : memref<2x16x256xbf16, #tpu.memory_space<vmem>>, vector<1x16x256xbf16>
    %20 = vector.shape_cast %19 : vector<1x16x256xbf16> to vector<16x256xbf16>
    %cst = arith.constant 2.001950e-01 : bf16
    %21 = vector.broadcast %cst : bf16 to vector<16x256xbf16>
    %22 = arith.mulf %21, %20 : vector<16x256xbf16>
    %23 = arith.maximumf %20, %22 : vector<16x256xbf16>
    %24 = vector.extract_strided_slice %23 {offsets = [0, 0], sizes = [16, 128], strides = [1, 1]} : vector<16x256xbf16> to vector<16x128xbf16>
    %25 = vector.extract_strided_slice %23 {offsets = [0, 1], sizes = [16, 128], strides = [1, 1]} : vector<16x256xbf16> to vector<16x128xbf16>
    %26 = vector.extract_strided_slice %23 {offsets = [0, 2], sizes = [16, 128], strides = [1, 1]} : vector<16x256xbf16> to vector<16x128xbf16>
    %27 = vector.extract_strided_slice %23 {offsets = [0, 3], sizes = [16, 128], strides = [1, 1]} : vector<16x256xbf16> to vector<16x128xbf16>
    %28 = vector.extract_strided_slice %23 {offsets = [0, 4], sizes = [16, 128], strides = [1, 1]} : vector<16x256xbf16> to vector<16x128xbf16>
    %29 = vector.extract_strided_slice %23 {offsets = [0, 5], sizes = [16, 128], strides = [1, 1]} : vector<16x256xbf16> to vector<16x128xbf16>
    %30 = vector.extract_strided_slice %23 {offsets = [0, 6], sizes = [16, 128], strides = [1, 1]} : vector<16x256xbf16> to vector<16x128xbf16>
    %31 = tpu.concatenate %24, %25, %26, %27, %28, %29, %30 in 0 : vector<16x128xbf16>, vector<16x128xbf16>, vector<16x128xbf16>, vector<16x128xbf16>, vector<16x128xbf16>, vector<16x128xbf16>, vector<16x128xbf16> -> vector<112x128xbf16>
    %c0_8 = arith.constant 0 : index
    %c0_9 = arith.constant 0 : index
    %32 = vector.load %arg4[%c0_8, %c0_9] : memref<24x112xbf16, #tpu.memory_space<vmem>>, vector<24x112xbf16>
    %cst_10 = arith.constant dense<0.000000e+00> : vector<24x128xf32>
    %33 = tpu.matmul %32, %31, %cst_10 {dimension_numbers = #tpu.dot_dimension_numbers<[1], [0], [0], [1], [0, 0, 1, 1], [], []>} : vector<24x112xbf16>, vector<112x128xbf16>, vector<24x128xf32> -> vector<24x128xf32>
    %c0_11 = arith.constant 0 : index
    %c0_12 = arith.constant 0 : index
    %34 = vector.load %arg5[%c0_11, %c0_12] : memref<24x1xf32, #tpu.memory_space<vmem>>, vector<24x1xf32>
    %35 = vector.broadcast %34 : vector<24x1xf32> to vector<24x128xf32>
    %36 = arith.addf %33, %35 : vector<24x128xf32>
    %37 = arith.truncf %36 : vector<24x128xf32> to vector<24x128xbf16>
    %c0_13 = arith.constant 0 : index
    %c0_14 = arith.constant 0 : index
    %c0_15 = arith.constant 0 : index
    %38 = vector.load %arg6[%c0_13, %c0_14, %c0_15] : memref<1x24x128xbf16, #tpu.memory_space<vmem>>, vector<1x24x128xbf16>
    %39 = vector.shape_cast %38 : vector<1x24x128xbf16> to vector<24x128xbf16>
    %40 = vector.shape_cast %37 : vector<24x128xbf16> to vector<1x24x128xbf16>
    tpu.vector_store %arg6[%c0_13, %c0_14, %c0_15], %40 {strides = array<i32>} : memref<1x24x128xbf16, #tpu.memory_space<vmem>>, vector<1x24x128xbf16>,
    return
  }
  func.func @transform_1(%arg0: i32, %arg1: i32, %arg2: i32) -> (i32, i32) {
    %c0_i32 = arith.constant 0 : i32
    %c0_i32_0 = arith.constant 0 : i32
    %c0_i32_1 = arith.constant 0 : i32
    return %c0_i32, %c0_i32_0 : i32, i32
  }
  func.func @transform_2(%arg0: i32, %arg1: i32, %arg2: i32) -> (i32, i32) {
    %c0_i32 = arith.constant 0 : i32
    %c0_i32_0 = arith.constant 0 : i32
    %c0_i32_1 = arith.constant 0 : i32
    return %c0_i32, %c0_i32_0 : i32, i32
  }
  func.func @transform_3(%arg0: i32, %arg1: i32, %arg2: i32) -> (i32, i32, i32) {
    %c3_i32 = arith.constant 3 : i32
    %0 = arith.muli %arg1, %c3_i32 : i32
    %1 = arith.addi %0, %arg2 : i32
    %c0_i32 = arith.constant 0 : i32
    %c0_i32_0 = arith.constant 0 : i32
    return %arg0, %c0_i32, %1 : i32, i32, i32
  }
}

</mosaic_0001>

<bundles_post_ra>
// kernel: tpu_custom_call.1
= control target key start
LH: loop header
LB: loop body
LE: loop exit
PB: predicated region body
PF: predicated region fallthrough
CT: control target
= control target key end

     0   :  { %8 = vsyncpa [#allocation5], 0  ;;  %s1130_s0 = inlined_call_operand.hbm [shape: bf16[2,16,896], index: 0, kind: input, shape index: {}]   ;;  %s1131_s1 = inlined_call_operand.vmem [shape: bf16[24,112], index: 1, kind: input, shape index: {}]   ;;  %s1132_s2 = inlined_call_operand.vmem [shape: f32[24,1], index: 2, kind: input, shape index: {}]   ;;  %s1133_s3 = inlined_call_operand.hbm [shape: bf16[2,24,768], index: 3, kind: output, shape index: {}]  }
   0x1   :  { %10 = vsyncpa [#allocation5 + $0x1], 0  ;;  %s881_s12 = smov 0   ;;  %s883_s13 = smov 0  }
   0x2   :  { %s885_s14 = smov 0   ;;  %s887_s15 = smov 0  }
   0x3   :  { %s889_s16 = smov 0   ;;  %s891_s17 = smov 0  }
   0x4   :  { %s893_s18 = smov 0   ;;  %s895_s19 = smov 0  }
   0x5   :  { %s897_s20 = smov 0   ;;  %s899_s21 = smov 0  }
   0x6 LB: > { %1143 = sst [smem:[#allocation14_spill]] %s822_s18  ;;  %s516_s22 = sadd.s32 4294967295, %s834_s21   ;;  %s834_s21 = sphi %s899_s21, %s16_s21   ;;  %s830_s20 = sphi %s897_s20, %s1162_s20   ;;  %s826_s19 = sphi %s895_s19, %s1161_s19   ;;  %s822_s18 = sphi %s893_s18, %s1160_s18   ;;  %s818_s17 = sphi %s891_s17, %s1159_s17   ;;  %s814_s16 = sphi %s889_s16, %s1158_s16   ;;  %s810_s15 = sphi %s887_s15, %s1157_s15   ;;  %s806_s14 = sphi %s885_s14, %s1165_s14   ;;  %s802_s13 = sphi %s883_s13, %s1164_s13   ;;  %s798_s12 = sphi %s881_s12, %s1163_s12  }
   0x7   : > { %1144 = sst [smem:[#allocation15_spill]] %s826_s19  ;;  %s517_s23 = sadd.s32 4294967294, %s834_s21  }
   0x8   : > { %1145 = sst [smem:[#allocation16_spill]] %s830_s20  ;;  %s28_s24 = sadd.s32 1, %s822_s18 }
   0x9   : > { %p29_p0 = scmp.ge.s32.totalorder %s28_s24, 3  ;;  %s31_s25 = sadd.s32 1, %s826_s19 }
   0xa   : > { %s35_s26 = sadd.s32 1, %s830_s20  ;;  %s81_s27 = smul.u32 3, %s826_s19 }
   0xb   : > { %s1167_s24 = smov (%p29_p0, %s28_s24), 0  ;;  %s1169_s25 = smov (!%p29_p0, %s31_s25), %s826_s19 }
   0xc   : > { %1146 = sst [smem:[#allocation17_spill]] %s1167_s24  ;;  %s82_s28 = sadd.s32 %s822_s18, %s81_s27 }
   0xd   : > { %p100_p1 = scmp.ne.s32.totalorder %s806_s14, %s802_s13  ;;  %p33_p2 = scmp.ge.s32.totalorder %s1169_s25, 2 }
   0xe   : > { %p101_p3 = scmp.eq.s32.totalorder %s516_s22, 11  ;;  %p106_p4 = scmp.ne.s32.totalorder %s802_s13, %s798_s12 }
   0xf   : > { %p107_p5 = scmp.eq.s32.totalorder %s517_s23, 11  ;;  %s1171_s25 = smov (%p33_p2, %s1169_s25), 0 }
  0x10   : > { %1147 = sst [smem:[#allocation18_spill]] %s1171_s25  ;;  %s1173_s26 = smov (!%p33_p2, %s35_s26), %s830_s20 }
  0x11   : > { %s83_s29 = smul.u32 3, %s1171_s25  ;;  %p949_p6 = por %p101_p3, %p100_p1 }
  0x12   : > { %p37_p7 = scmp.ge.s32.totalorder %s1173_s26, 2  ;;  %p953_p8 = por %p107_p5, %p106_p4 }
  0x13   : > { %s84_s5 = sadd.s32 %s83_s29, %s1167_s24  ;;  %p519_p9 = scmp.ge.s32.totalorder %s834_s21, 1 }
  0x14   : > { %s1175_s26 = smov (%p37_p7, %s1173_s26), 0  ;;  %s86_s6 = ssub.s32 %s82_s28, %s84_s5 }
  0x15   : > { %1150 = sst [smem:[#allocation19_spill]] %s1175_s26  ;;  %p131_p10 = scmp.lt.s32.totalorder %s834_s21, 13 }
  0x16   : > { %s85_s7 = ssub.s32 %s830_s20, %s1175_s26  ;;  %s90_s8 = sadd.s32 1, %s806_s14 }
  0x17   : > { %s87_s9 = sor.u32 %s86_s6, %s85_s7  ;;  %p132_p11 = pnand %p519_p9, %p131_p10 }
  0x18   : > { %p88_p12 = scmp.eq.s32.totalorder %s87_s9, 0  ;;  %s1134_s11 = sand.u32 (!%p132_p11), 1, %s802_s13  }
  0x19   : > { %135 = sbr.rel (%p132_p11) target bundleno = 451 (0x1c3), region = 28  ;;  %p611_p13 = scmp.eq.s32.totalorder (!%p132_p11), %s810_s15, 0 }
  0x1a   : > { %s966_s10 = scalar_select %p88_p12, %s806_s14, %s90_s8  }
  0x1b   : > { %s152_s22 = smul.u32 (!%p132_p11), 3, %s814_s16 }
  0x1c   : > { %1151 = sst [smem:[#allocation20_spill]] %s966_s10  ;;  %s585_s23 = smul.u32 (!%p132_p11), 12, %s1134_s11 }
  0x1d   : > { %s973_s27 = sadd.s32 (!%p132_p11), %s810_s15, %s152_s22 }
  0x1e   : > { %s976_s28 = scalar_lea.vmem (!%p132_p11), [#allocation4], %s585_s23 }
  0x20   : > { %s1136_s29 = sshll.u32 %s973_s27, 7  ;;  %s1137_s5 = smul.u32 14, %s818_s17 }
  0x21   : > { %s159_s6 = sshra.s32 %s1136_s29, 7  ;;  %s836_s7 = smov [#allocation2]  }
  0x22   : > { %s162_s16 = sadd.s32 %s1137_s5, %s159_s6  ;;  %s177_s8 = sshll.u32 %s836_s7, 4  ;;  %s178_s8 = int_to_ptr.vmem [resolvable:$true] %s177_s8 }
  0x23   : > { %s522_s9 = sshll.u32 %s162_s16, 6  ;;  %s837_s23 = smov 64  }
  0x24   : > { %s588_s22 = scalar_select %p611_p13, [#allocation0], [#allocation10] }
  0x25   : > { %589 = sst [smem:[#allocation7]] (%p611_p13), %s837_s23  ;;  %s838_s26 = smov 128  }
  0x26   : > { %s169_s11 = sld [smem:[%s588_s22]]   ;;  %s839_s29 = smov 2  }
  0x27   : > { %590 = sst [smem:[#allocation7 + $0x1]] (%p611_p13), %s838_s26  ;;  %s164_s7 = scalar_lea.hbm %s1130_s0, %s522_s9 }
  0x28   : > { %591 = sst [smem:[#allocation7 + $0x2]] (%p611_p13), %s839_s29  ;;  %s840_s25 = smov 448  }
  0x29   : > { %592 = sst [smem:[#allocation7 + $0x3]] (%p611_p13), %s840_s25  ;;  %s841_s16 = smov 4  }
  0x2a   : > { %593 = sst [smem:[#allocation7 + $0x4]] (%p611_p13), %s837_s23  ;;  %s842_s20 = smov [#allocation3]  }
  0x2b   : > { %594 = sst [smem:[#allocation7 + $0x5]] (%p611_p13), %s841_s16  ;;  %s843_s19 = smov [#allocation6]  }
  0x2c   : > { %s523_s24 = sshll.u32 %s169_s11, 26  ;;  %s1004_s26 = sand.u32 1, %s810_s15 }
  0x2d   : > { %s524_s22 = sadd.s32 134217728, %s523_s24  ;;  %s546_s29 = sshll.u32 %s1004_s26, 4 }
  0x2e   : > { %595 = dma.general (%p611_p13), %s164_s7, 256, %s178_s8, %s842_s20, %s843_s19, [#allocation7], %s524_s22, 0  }
  0x2f   : > { %s1007_s5 = scalar_lea.vmem [#allocation2], %s546_s29  ;;  %s199_s25 = scalar_lea.sflag [#allocation3], %s1004_s26 }
  0x30   : > { %790 = dma.done.wait %s199_s25, 256 }
  0x31   : > { %791 = vsyncadd %s199_s25, 4294967040  ;;  %s204_s9 = sadd.s32 1, %s810_s15 }
  0x32   : > { %p1011_p0 = scmp.lt.s32.totalorder %s204_s9, 3 }
  0x33   : > { %s210_s19 = ssub.s32 1, %s1004_s26  ;;  %s1153_s20 = sshll.u32 %s973_s27, 7  ;;  %vm330_vm0 = vcmask 916480   ;;  %v855_v7 = vmov 0   ;;  %vm263_vm1 = vcmask 1039360   ;;  %vm270_vm2 = vcmask 1031168  }
  0x34   : > { %s548_s24 = sadd.s32 128, %s1153_s20  ;;  %s549_s23 = sshll.u32 %s210_s19, 4  ;;  %719 = vset.pattern.permute.xlu1 %v855_v7  ;;  %718 = vset.pattern.permute.xlu0 %v855_v7  ;;  %vm277_vm3 = vcmask 1022976   ;;  %vm284_vm4 = vcmask 1014784   ;;  %vm291_vm5 = vcmask 1006592   ;;  %vm298_vm6 = vcmask 998400  }
  0x35   : > { %s212_s8 = sshra.s32 %s548_s24, 7  ;;  %s1154_s6 = smul.u32 14, %s818_s17 }
  0x36   : > { %s597_s25 = scalar_select %p1011_p0, [#allocation0], [#allocation11] }
  0x37   : > { %s215_s7 = sadd.s32 %s212_s8, %s1154_s6  ;;  %s220_s9 = scalar_lea.vmem [#allocation2], %s549_s23 }
  0x38   : > { %s529_s15 = sshll.u32 %s215_s7, 6  ;;  %s234_s18 = sshll.u32 %s220_s9, 4  ;;  %s235_s18 = int_to_ptr.vmem [resolvable:$true] %s234_s18 }
  0x39   : > { %s217_s29 = scalar_lea.hbm %s1130_s0, %s529_s15  ;;  %s226_s26 = sld [smem:[%s597_s25]]  }
  0x3a   : > { %s844_s10 = smov 64   ;;  %s845_s20 = smov 128  }
  0x3b   : > { %598 = sst [smem:[#allocation9]] (%p1011_p0), %s844_s10  ;;  %s846_s24 = smov 2  }
  0x3c   : > { %599 = sst [smem:[#allocation9 + $0x1]] (%p1011_p0), %s845_s20  ;;  %s847_s8 = smov 448  }
  0x3d   : > { %600 = sst [smem:[#allocation9 + $0x2]] (%p1011_p0), %s846_s24  ;;  %s848_s23 = smov 4  }
  0x3e   : > { %601 = sst [smem:[#allocation9 + $0x3]] (%p1011_p0), %s847_s8  ;;  %s221_s15 = scalar_lea.sflag [#allocation3], %s210_s19 }
  0x3f   : > { %602 = sst [smem:[#allocation9 + $0x4]] (%p1011_p0), %s844_s10  ;;  %s532_s6 = sshll.u32 %s226_s26, 26 }
  0x40   : > { %603 = sst [smem:[#allocation9 + $0x5]] (%p1011_p0), %s848_s23  ;;  %s533_s7 = sadd.s32 134217728, %s532_s6 }
  0x41   : > { %s849_s16 = smov [#allocation8]   ;;  %s850_s22 = smov 126  }
  0x42   : > { %604 = dma.general (%p1011_p0), %s217_s29, 256, %s235_s18, %s221_s15, %s849_s16, [#allocation9], %s533_s7, 0  }
  0x43   : > { %v251_v0 = vld [vmem:[%s1007_s5] sm:$0xff]  ;;  %v252_v1 = vld [vmem:[%s1007_s5 + $0x8] sm:$0xff]  ;;  %s851_s25 = smov 127   ;;  %s852_s10 = smov 125  }
  0x44   : > { %v253_v2 = vmul.bf16 1045249613, %v251_v0  ;;  %v254_v3 = vmul.bf16 1045249613, %v252_v1  ;;  %s853_s18 = smov 124   ;;  %v720_v6 = vld [vmem:[%s1131_s1] sm:$0xff]  }
  0x45   : > { %581 = vmatprep.mubr.msk.bf16.mxu0 %vm330_vm0, %v720_v6  ;;  %s854_s19 = smov 123   ;;  %s856_s29 = smov 122   ;;  %v305_v8 = vld [vmem:[%s1132_s2 + $0x8] sm:$0xff]  ;;  %v304_v9 = vld [vmem:[%s1132_s2] sm:$0xff]  ;;  %v306_v10 = vld [vmem:[%s1132_s2 + $0x10] sm:$0xff] }
  0x46   : > { %v255_v4 = vmax.bf16 %v253_v2, %v251_v0  ;;  %v256_v5 = vmax.bf16 %v254_v3, %v252_v1  ;;  %v721_v29 = vld [vmem:[%s1131_s1 + $0x8] ss:$0 sps:$4 sm:$0xff]   ;;  %s586_s15 = smul.u32 18, %s818_s17 }
  0x48   : > { %266 = vrot.lane.b32.xlu1 %v255_v4, %s850_s22  ;;  %259 = vrot.lane.b32.xlu0 %v255_v4, %s851_s25  ;;  %s415_s16 = sadd.s32 %s586_s15, %s973_s27  ;;  %s1155_s27 = sand.u32 1, %s802_s13  }
  0x49   : > { %567 = vmatprep.subr.bf16.mxu0 %v255_v4  ;;  %s1072_s11 = scalar_lea.sflag [#allocation5], %s1155_s27 }
  0x4a   : > { %568 = vmatpush3.bf16.msra.mxu0 %v255_v4 }
  0x4c   : > { %268 = vrot.lane.b32.xlu1 %v256_v5, %s850_s22  ;;  %261 = vrot.lane.b32.xlu0 %v256_v5, %s851_s25  ;;  %s541_s22 = sshll.u32 %s415_s16, 6  ;;  %s418_s25 = sshll.u32 %s976_s28, 4  ;;  %s1067_s25 = int_to_ptr.vmem [resolvable:$true] %s418_s25 }
  0x4d   : > { %s1064_s17 = scalar_lea.hbm %s1133_s3, %s541_s22  ;;  %s722_s5 = scalar_lea.vmem %s1067_s25, 192 }
  0x4e   : > { %p723_p1 = scmp.ne.s32.totalorder %s1067_s25, %s722_s5 }
  0x50   : > { %275 = vrot.lane.b32.xlu1 %v256_v5, %s852_s10  ;;  %273 = vrot.lane.b32.xlu0 %v255_v4, %s852_s10  ;;  %p724_p2 = pnand %p723_p1, %p949_p6 }
  0x52   : > { %p725_p3 = pneg %p724_p2 }
  0x54   : > { %282 = vrot.lane.b32.xlu1 %v256_v5, %s853_s18  ;;  %280 = vrot.lane.b32.xlu0 %v255_v4, %s853_s18 }
  0x58   : > { %289 = vrot.lane.b32.xlu1 %v256_v5, %s854_s19  ;;  %287 = vrot.lane.b32.xlu0 %v255_v4, %s854_s19  ;;  %s857_s19 = smov [#allocation4]  }
  0x5c   : > { %296 = vrot.lane.b32.xlu1 %v256_v5, %s856_s29  ;;  %294 = vrot.lane.b32.xlu0 %v255_v4, %s856_s29  ;;  %s726_s29 = sshll.u32 %s857_s19, 4  ;;  %s727_s29 = int_to_ptr.vmem [resolvable:$false] %s726_s29 }
  0x5d   : > { %s728_s9 = scalar_lea.vmem %s727_s29, 384  ;;  %p729_p4 = scmp.lt.s32.totalorder %s1067_s25, %s727_s29 }
  0x5e   : > { %p730_p5 = scmp.lt.s32.totalorder %s728_s9, %s722_s5 }
  0x60   : > { %314 = vperm.xlu1 %719, %v305_v8   ;;  %309 = vperm.xlu0 %718, %v304_v9   ;;  %p731_p7 = por %p730_p5, %p729_p4 }
  0x62   : > { %p732_p9 = pnand %p731_p7, %p725_p3 }
  0x64   : > { %319 = vperm.xlu1 %719, %v306_v10  }
  0xba   : > { %v267_v11 = vpop.permute.xlu1 %266  ;;  %v260_v12 = vpop.permute.xlu0 %259 }
  0xbe   : > { %v269_v13 = vpop.permute.xlu1 %268  ;;  %v262_v14 = vpop.permute.xlu0 %261 }
  0xbf   : > { %v264_v15 = vsel %vm263_vm1, %v260_v12, %v262_v14  ;;  %v271_v16 = vsel %vm270_vm2, %v267_v11, %v269_v13 }
  0xc0   : > { %569 = vmatprep.subr.bf16.mxu0 %v264_v15 }
  0xc1   : > { %570 = vmatpush3.bf16.msra.mxu0 %v264_v15 }
  0xc2   : > { %571 = vmatprep.subr.bf16.mxu0 %v271_v16  ;;  %v276_v17 = vpop.permute.xlu1 %275  ;;  %v274_v18 = vpop.permute.xlu0 %273 }
  0xc3   : > { %v278_v19 = vsel %vm277_vm3, %v274_v18, %v276_v17 }
  0xc5   : > { %572 = vmatpush3.bf16.msra.mxu0 %v271_v16 }
  0xc6   : > { %573 = vmatprep.subr.bf16.mxu0 %v278_v19  ;;  %v283_v20 = vpop.permute.xlu1 %282  ;;  %v281_v21 = vpop.permute.xlu0 %280 }
  0xc7   : > { %v285_v22 = vsel %vm284_vm4, %v281_v21, %v283_v20 }
  0xc9   : > { %574 = vmatpush3.bf16.msra.mxu0 %v278_v19 }
  0xca   : > { %575 = vmatprep.subr.bf16.mxu0 %v285_v22  ;;  %v290_v23 = vpop.permute.xlu1 %289  ;;  %v288_v24 = vpop.permute.xlu0 %287 }
  0xcb   : > { %v292_v25 = vsel %vm291_vm5, %v288_v24, %v290_v23 }
  0xcd   : > { %576 = vmatpush3.bf16.msra.mxu0 %v285_v22 }
  0xce   : > { %577 = vmatprep.subr.bf16.mxu0 %v292_v25  ;;  %v297_v26 = vpop.permute.xlu1 %296  ;;  %v295_v27 = vpop.permute.xlu0 %294 }
  0xcf   : > { %v299_v28 = vsel %vm298_vm6, %v295_v27, %v297_v26 }
  0xd1   : > { %578 = vmatpush3.bf16.msra.mxu0 %v292_v25 }
  0xd2   : > { %579 = vmatprep.subr.bf16.mxu0 %v299_v28 }
  0xd5   : > { %580 = vmatpush3.bf16.msra.mxu0 %v299_v28 }
  0xd8   : > { %582 = vmatmul.mubr.msk.bf16.vlgmr.msra.gmra.mrb[0].mxu0 %vm330_vm0, %v721_v29 }
  0xdf   : > { %v315_v30 = vpop.permute.xlu1 %314  ;;  %v310_v34 = vpop.permute.xlu0 %309 }
  0xe3   : > { %v320_v31 = vpop.permute.xlu1 %319 }
 0x1ab   : > { %v583_v32 = vpop.f32.mrb[0].mxu0 }
 0x1ac   : > { %v380_v33 = vadd.f32 %v583_v32, %v320_v31  ;;  %v371_v35 = vpop.f32.mrb[1].mxu0 }
 0x1ad   : > { %v584_v36 = vpop.f32.mrb[2].mxu0  ;;  %v372_v39 = vadd.f32 %v371_v35, %v310_v34 }
 0x1ae   : > { %v552_v37 = vpack.c.bf16 %v380_v33, %v380_v33  ;;  %v374_v38 = vpop.f32.mrb[3].mxu0 }
 0x1af   : > { %v375_v40 = vadd.f32 %v374_v38, %v315_v30 }
 0x1b0   : > { %400 = vst [vmem:[%s976_s28 + $0x8] sm:$0xf] %v552_v37 }
 0x1b1   : > { %v556_v41 = vpack.c.bf16 %v375_v40, %v372_v39 }
 0x1b3   : > { %557 = vst [vmem:[%s976_s28] sm:$0xff] %v556_v41  }
 0x1b4   : > { %735 = shalt.err (!%p732_p9)
}
 0x1b5   : > { %s736_s28 = scalar_lea.hbm %s1064_s17, 192  ;;  %s740_s24 = scalar_lea.hbm %s1133_s3, 2304 }
 0x1b6   : > { %p737_p10 = scmp.ne.s32.totalorder %s1064_s17, %s736_s28  ;;  %p741_p13 = scmp.lt.u32.totalorder %s1064_s17, %s1133_s3 }
 0x1b7   : > { %p742_p0 = scmp.lt.u32.totalorder %s740_s24, %s736_s28  ;;  %p744_p2 = scmp.lt.u32.totalorder %s736_s28, %s1064_s17 }
 0x1b8   : > { %p738_p11 = pnand %p737_p10, %p949_p6 }
 0x1b9   : > { %p743_p1 = por %p742_p0, %p741_p13 }
 0x1ba   : > { %p739_p12 = pneg %p738_p11 }
 0x1bb   : > { %p745_p3 = por %p744_p2, %p743_p1 }
 0x1bd   : > { %p746_p4 = pnand %p745_p3, %p739_p12 }
 0x1bf   : > { %749 = shalt.err (!%p746_p4)
}
 0x1c0   : > { %s858_s23 = smov 64   ;;  %s859_s7 = smov 384  }
 0x1c1   : > { %s860_s15 = smov 4  }
 0x1c2   : > { %605 = dma.vmem_to_hbm [thread:$0]  (%p949_p6), %s1067_s25, 192, %s1064_s17, %s1072_s11, %s858_s23, %s859_s7, %s860_s15  }
 0x1c3 PF: > { %p613_p5 = scmp.ge.s32.totalorder %s834_s21, 2  ;;  %s433_s16 = sand.u32 1, %s798_s12  }
 0x1c4   : > { %s434_s22 = scalar_lea.sflag [#allocation5], %s433_s16 }
 0x1c5   : > { %p608_p7 = pnand %p613_p5, %p953_p8 }
 0x1c7   : > { %793 = dma.done.wait (!%p608_p7), %s434_s22, 192  }
 0x1c8   : > { %795 = vsyncadd (!%p608_p7), %s434_s22, 4294967104  ;;  %s16_s21 = sadd.s32 1, %s834_s21   ;;  %s1156_s10 = sld [smem:[#allocation20_spill]] }
 0x1c9   : > { %p13_p9 = scmp.ge.s32.totalorder %s16_s21, 14   ;;  %s1157_s15 = sld [smem:[#allocation14_spill]] }
 0x1ca   : > { %s1158_s16 = sld [smem:[#allocation15_spill]]  ;;  %s1159_s17 = sld [smem:[#allocation16_spill]] }
 0x1cb   : > { %s1160_s18 = sld [smem:[#allocation17_spill]]  ;;  %s1161_s19 = sld [smem:[#allocation18_spill]] }
 0x1cc   : > { %s1162_s20 = sld [smem:[#allocation19_spill]]  ;;  %s1163_s12 = smov %s802_s13 }
 0x1cd   : > { %s1164_s13 = smov %s806_s14  ;;  %15 = sbr.rel (!%p13_p9) target bundleno = 6 (0x6), region = 85 }
 0x1ce   : > { %s1165_s14 = smov %s1156_s10 }
 0x1d4   :  { %439 = vsyncpa [#allocation5], 1 }
 0x1d5   :  { %441 = vsyncpa [#allocation5 + $0x1], 1 }
 0x1d6   :  { %442 = vsyncmov [#allocation3] }
 0x1d9   :  { %s443_s30 = vpop.sfrf %442 }
 0x1da   :  { %p544_p6 = scmp.ne.s32.totalorder %s443_s30, 0 }
 0x1dc   :  { %447 = shalt.err (%p544_p6)  }
 0x1dd   :  { %449 = vsyncmov [#allocation3 + $0x1] }
 0x1e0   :  { %s450_s4 = vpop.sfrf %449 }
 0x1e1   :  { %p545_p8 = scmp.ne.s32.totalorder %s450_s4, 0 }
 0x1e3   :  { %454 = shalt.err (%p545_p8)  }

</bundles_post_ra>
